<compile_context>
chip_gen: v7x
topology: tpu7x:2x2x1
jax: 0.10.0
libtpu: 0.0.40
codegen_flags: <defaults>
</compile_context>

<pallas_src>
import math
import numpy as np
import jax
import jax.numpy as jnp
from jax import lax
from jax.experimental import pallas as pl
from jax.experimental.pallas import tpu as pltpu

EPS = 1e-5  # nn.LayerNorm default eps

# Row indices inside the packed (16, D) parameter slab.
_LN1G_P, _LN1B_P, _LN1G_I, _LN1B_I = 0, 1, 2, 3
_B11, _B12 = 4, 5
_LN2G, _LN2B, _B21, _B22 = 6, 7, 8, 9
_LN3G, _LN3B = 10, 11
_PACK_ROWS = 16  # padded to a full 16-sublane tile


def _layernorm(x, g, b):
    mean = jnp.mean(x, axis=-1, keepdims=True)
    var = jnp.mean((x - mean) ** 2, axis=-1, keepdims=True)  # biased, like torch
    return (x - mean) * lax.rsqrt(var + EPS) * g + b


def _gelu_kernel(x):
    # tanh approximation -> EUP (separate VLIW slot) instead of a long erf
    # polynomial on the VALU; accuracy delta is well inside the bf16 budget.
    return jax.nn.gelu(x, approximate=True)


def _gelu_exact(x):
    # nn.GELU() default (erf) — used by the pure-JAX reference only.
    return 0.5 * x * (1.0 + lax.erf(x * (1.0 / math.sqrt(2.0))))


def fuse_kernel(p_ref, id_ref, pp_ref,
                w11p_ref, w11i_ref, w12_ref, w21_ref, w22_ref,
                out_ref):
    p = p_ref[...].astype(jnp.float32)     # (T, D) image/class token embeds
    idv = id_ref[...].astype(jnp.float32)  # (T, D) valid id embeds
    pp = pp_ref[...]                       # (16, D) packed f32 biases / LN params
    d = p.shape[-1]
    two_d = 2.0 * d

    row = lambda r: pp[r:r + 1, :]         # (1, D), broadcasts over the row tile

    # ---- LayerNorm over the *virtual* concat axis [p | idv] (no materialized cat)
    mean = (jnp.sum(p, axis=-1, keepdims=True)
            + jnp.sum(idv, axis=-1, keepdims=True)) / two_d
    pc = p - mean
    ic = idv - mean
    var = (jnp.sum(pc * pc, axis=-1, keepdims=True)
           + jnp.sum(ic * ic, axis=-1, keepdims=True)) / two_d
    inv = lax.rsqrt(var + EPS)
    p_n = pc * inv * row(_LN1G_P) + row(_LN1B_P)
    i_n = ic * inv * row(_LN1G_I) + row(_LN1B_I)

    # ---- mlp1 (in=2D, out=D, hidden=D, no residual), fc1 split across halves:
    # cat([p_n, i_n]) @ w11 == p_n @ w11[:D] + i_n @ w11[D:]
    h = (jnp.dot(p_n.astype(w11p_ref.dtype), w11p_ref[...],
                 preferred_element_type=jnp.float32)
         + jnp.dot(i_n.astype(w11i_ref.dtype), w11i_ref[...],
                   preferred_element_type=jnp.float32)
         + row(_B11))
    h = _gelu_kernel(h)
    x = jnp.dot(h.astype(w12_ref.dtype), w12_ref[...],
                preferred_element_type=jnp.float32) + row(_B12)

    # ---- + prompt_embeds
    x = x + p

    # ---- mlp2 (in=D, out=D, hidden=D, residual)
    # TODO(synk): on v6e/v7x the inter-matmul activations could be kept in bf16
    # to halve vreg/VMEM pressure; kept f32 here so v5e (no bf16 VPU) is safe.
    res = x
    x2 = _layernorm(x, row(_LN2G), row(_LN2B))
    h2 = _gelu_kernel(jnp.dot(x2.astype(w21_ref.dtype), w21_ref[...],
                              preferred_element_type=jnp.float32) + row(_B21))
    x2 = jnp.dot(h2.astype(w22_ref.dtype), w22_ref[...],
                 preferred_element_type=jnp.float32) + row(_B22)
    x = x2 + res

    # ---- final layer_norm, written in the caller's dtype
    out_ref[...] = _layernorm(x, row(_LN3G), row(_LN3B)).astype(out_ref.dtype)


def init_fuse_params(embed_dim, key):
    D = embed_dim
    ks = jax.random.split(key, 8)

    def lin(k, fan_in, fan_out):
        # deterministic synthetic init (weights stored as (in, out) for x @ W)
        bound = 1.0 / math.sqrt(fan_in)
        kw, kb = jax.random.split(k)
        w = jax.random.uniform(kw, (fan_in, fan_out), jnp.float32, -bound, bound)
        b = jax.random.uniform(kb, (1, fan_out), jnp.float32, -bound, bound)
        return w, b

    w11, b11 = lin(ks[0], 2 * D, D)   # mlp1.fc1
    w12, b12 = lin(ks[1], D, D)       # mlp1.fc2
    w21, b21 = lin(ks[2], D, D)       # mlp2.fc1
    w22, b22 = lin(ks[3], D, D)       # mlp2.fc2
    return dict(
        ln1_g=jnp.ones((1, 2 * D), jnp.float32), ln1_b=jnp.zeros((1, 2 * D), jnp.float32),
        w11=w11, b11=b11, w12=w12, b12=b12,
        ln2_g=jnp.ones((1, D), jnp.float32), ln2_b=jnp.zeros((1, D), jnp.float32),
        w21=w21, b21=b21, w22=w22, b22=b22,
        ln3_g=jnp.ones((1, D), jnp.float32), ln3_b=jnp.zeros((1, D), jnp.float32),
    )


def _round_up(x, m):
    return ((x + m - 1) // m) * m


def _device_kind():
    try:
        return jax.devices()[0].device_kind.lower()
    except Exception:
        return ""


def _device_vmem_bytes():
    # Physical VMEM per TensorCore: 128 MiB on v5e/v6e, 64 MiB on v7x.
    try:
        cap = int(getattr(pltpu.get_tpu_info(), "vmem_capacity_bytes", 0))
        if cap > 0:
            return cap
    except Exception:
        pass
    kind = _device_kind()
    if ("v7" in kind) or ("7x" in kind):
        return 64 << 20
    return 128 << 20


def _preferred_row_tile():
    kind = _device_kind()
    if "v6" in kind:
        return 256   # fills the 2x256^2 MXU; 128 MiB VMEM affords it
    return 128       # v5e (4x128^2 MXU) and v7x (only 64 MiB VMEM)


def _choose_tile(n, d, in_itemsize, out_itemsize, weight_bytes, vmem_cap):
    """Largest 16-aligned row tile that fits VMEM without huge row padding."""
    n16 = _round_up(max(n, 1), 16)
    # Budget left for the (double-buffered) row tiles + in-kernel temporaries.
    budget = vmem_cap - weight_bytes - (8 << 20)
    # Per-row footprint: 2x-buffered p/id inputs + 2x-buffered output tile
    # + ~12 live f32 (tile, D) temporaries inside the kernel body.
    per_row = (2 * 2 * in_itemsize + 2 * out_itemsize + 12 * 4) * d
    fit = (budget // per_row) if budget > 0 else 16
    fit = max(16, (int(fit) // 16) * 16)
    tile = min(_preferred_row_tile(), fit, n16)
    tile = max(16, (tile // 16) * 16)
    # Shrink the tile when rounding N up to it would compute mostly garbage
    # rows (e.g. n=260 should not become 512 rows of matmul/DMA).
    while tile > 16 and (_round_up(n, tile) - n) > max(tile // 2, (15 * n) // 100):
        tile = max(16, ((tile // 2) // 16) * 16)
    return tile


def _pack_params(params, d):
    """Pack the 12 (1, D) bias / LN-parameter rows into one (16, D) f32 slab."""
    rows = [
        params["ln1_g"][:, :d], params["ln1_b"][:, :d],   # LN1, prompt half
        params["ln1_g"][:, d:], params["ln1_b"][:, d:],   # LN1, id half
        params["b11"], params["b12"],
        params["ln2_g"], params["ln2_b"],
        params["b21"], params["b22"],
        params["ln3_g"], params["ln3_b"],
    ]
    rows = [r.reshape(1, d).astype(jnp.float32) for r in rows]
    pad = jnp.zeros((_PACK_ROWS - len(rows), d), jnp.float32)
    return jnp.concatenate(rows + [pad], axis=0)


def fuse_fn_pallas(image_token_embeds, valid_id_embeds, params,
                   compute_dtype=jnp.bfloat16, tile=None):
    """FuseModule.fuse_fn on (N, D) rows via a single Pallas TPU kernel."""
    n, d = image_token_embeds.shape
    out_dtype = image_token_embeds.dtype
    in_dtype = image_token_embeds.dtype
    if n == 0:
        return jnp.zeros((0, d), out_dtype)

    # In production these would be packed/cast once outside the per-call path.
    packed = _pack_params(params, d)
    mm = lambda w: w.astype(compute_dtype)  # matmul weights in bf16 (f32 acc)
    mats = [mm(params["w11"][:d]), mm(params["w11"][d:]),
            mm(params["w12"]), mm(params["w21"]), mm(params["w22"])]

    weight_bytes = int(packed.size) * 4 + sum(
        int(m.size) * m.dtype.itemsize for m in mats)
    vmem_cap = _device_vmem_bytes()

    in_itemsize = image_token_embeds.dtype.itemsize
    out_itemsize = jnp.dtype(out_dtype).itemsize
    if tile is None:
        tile = _choose_tile(n, d, in_itemsize, out_itemsize, weight_bytes, vmem_cap)
    # 16-sublane alignment (covers bf16 packing), never over-pad tiny row counts.
    tile = max(16, _round_up(min(tile, _round_up(n, 16)), 16))
    n_pad = _round_up(n, tile)

    # Pad in the caller's dtype (the kernel upcasts); padded zero rows give
    # finite LN1 output (rsqrt(eps)*0 + bias) and are sliced off below.
    p_pad = jnp.zeros((n_pad, d), in_dtype).at[:n].set(image_token_embeds)
    id_pad = jnp.zeros((n_pad, d), in_dtype).at[:n].set(
        valid_id_embeds.astype(in_dtype))

    row_spec = pl.BlockSpec((tile, d), lambda i: (i, 0))
    # Params / weights never change block index -> single-buffer them.
    const_spec = lambda shape: pl.BlockSpec(shape, lambda i: (0, 0),
                                            pipeline_mode=pl.Buffered(1))

    # Scoped-VMEM budget: single-buffered weights + double-buffered row tiles
    # + in-kernel f32 temporaries + headroom, clamped to physical VMEM (v7x
    # only has 64 MiB per TensorCore).
    act_bytes = (2 * 2 * in_itemsize + 2 * out_itemsize) * tile * d
    tmp_bytes = 12 * tile * d * 4
    need = weight_bytes + act_bytes + tmp_bytes + (8 << 20)
    vmem_limit = int(min(vmem_cap - (4 << 20), max(32 << 20, need)))

    grid_n = n_pad // tile
    # Single-step grids stay "arbitrary": sharding a weight-DMA-bound call
    # across both v7x TensorCores would duplicate the weight DMA for nothing.
    semantics = ("parallel",) if grid_n > 1 else ("arbitrary",)

    out = pl.pallas_call(
        fuse_kernel,
        out_shape=jax.ShapeDtypeStruct((n_pad, d), out_dtype),
        grid=(grid_n,),
        in_specs=[row_spec, row_spec, const_spec((_PACK_ROWS, d))]
                 + [const_spec(m.shape) for m in mats],
        out_specs=row_spec,
        compiler_params=pltpu.CompilerParams(
            dimension_semantics=semantics,
            vmem_limit_bytes=vmem_limit),
    )(p_pad, id_pad, packed, *mats)
    return out[:n]


def fuse_fn_ref(p, idv, params):
    """Pure-JAX f32 reference of FuseModule.fuse_fn (for tolerance checks)."""
    x = jnp.concatenate([p, idv], axis=-1)
    x = _layernorm(x, params["ln1_g"], params["ln1_b"])
    h = _gelu_exact(x @ params["w11"] + params["b11"])
    x = h @ params["w12"] + params["b12"]
    x = x + p
    res = x
    x2 = _layernorm(x, params["ln2_g"], params["ln2_b"])
    h2 = _gelu_exact(x2 @ params["w21"] + params["b21"])
    x2 = h2 @ params["w22"] + params["b22"]
    x = x2 + res
    return _layernorm(x, params["ln3_g"], params["ln3_b"])


def _fuse_module_forward(prompt_embeds, id_embeds, class_tokens_mask, fuse_fn):
    """Shared glue for FuseModule.forward (gather -> fuse -> scatter)."""
    class_tokens_mask = np.asarray(class_tokens_mask, dtype=bool)
    B, S, D = prompt_embeds.shape
    id_embeds = id_embeds.astype(prompt_embeds.dtype)
    batch_size, max_num_inputs = id_embeds.shape[:2]
    # torch's boolean indexing of flat_id_embeds with a length-M mask is only
    # well defined for batch_size == 1.
    assert batch_size == 1, "FuseModule semantics assume batch_size == 1"

    num_inputs = int(class_tokens_mask.sum())
    flat_id_embeds = id_embeds.reshape(-1, id_embeds.shape[-2], id_embeds.shape[-1])
    valid_idx = np.nonzero(np.arange(max_num_inputs) < num_inputs)[0]
    valid_id_embeds = flat_id_embeds[valid_idx].reshape(-1, flat_id_embeds.shape[-1])

    prompt_flat = prompt_embeds.reshape(-1, D)
    tok_idx = np.nonzero(class_tokens_mask.reshape(-1))[0]
    image_token_embeds = prompt_flat[tok_idx]

    assert valid_id_embeds.shape[0] == len(tok_idx), (
        f"{len(tok_idx)} != {valid_id_embeds.shape[0]}")

    stacked_id_embeds = fuse_fn(image_token_embeds, valid_id_embeds)

    # TODO(synk): fuse this gather/scatter into the kernel (scalar-prefetch
    # token indices + input_output_aliases on the prompt buffer) to remove the
    # extra XLA launches; kept host-side because class_tokens_mask is static numpy.
    updated = prompt_flat.at[tok_idx].set(stacked_id_embeds.astype(prompt_flat.dtype))
    return updated.reshape(batch_size, S, -1)


def fuse_module_forward(prompt_embeds, id_embeds, class_tokens_mask, params,
                        compute_dtype=jnp.bfloat16):
    """JAX/Pallas equivalent of FuseModule.forward."""
    return _fuse_module_forward(
        prompt_embeds, id_embeds, class_tokens_mask,
        lambda p, i: fuse_fn_pallas(p, i, params, compute_dtype=compute_dtype))


def fuse_module_forward_ref(prompt_embeds, id_embeds, class_tokens_mask, params):
    return _fuse_module_forward(
        prompt_embeds, id_embeds, class_tokens_mask,
        lambda p, i: fuse_fn_ref(p, i, params))


if __name__ == "__main__":
    key = jax.random.PRNGKey(0)
    k_p, k_id, k_w = jax.random.split(key, 3)

    # Small shapes consistent with the module (B must be 1 for the torch
    # boolean-indexing semantics of id_embeds to be well defined). D=128 keeps
    # the embedding lane-dense.
    B, S, D = 1, 16, 128         # batch, seq_len, embed_dim
    M, T = 4, 1                  # max_num_inputs, id tokens per input

    prompt_embeds = jax.random.normal(k_p, (B, S, D), jnp.float32)
    id_embeds = jax.random.normal(k_id, (B, M, T, D), jnp.float32)

    # 3 class tokens in the sequence -> num_inputs = 3 valid id embeds used.
    class_tokens_mask = np.zeros((B, S), dtype=bool)
    class_tokens_mask[0, [2, 5, 9]] = True

    params = init_fuse_params(D, k_w)

    out = fuse_module_forward(prompt_embeds, id_embeds, class_tokens_mask, params)
    out = jax.block_until_ready(out)

    ref = fuse_module_forward_ref(prompt_embeds, id_embeds, class_tokens_mask, params)
    ref = jax.block_until_ready(ref)

    assert out.shape == (B, S, D)
    assert bool(jnp.all(jnp.isfinite(out)))
    # bf16 matmul weights + tanh-GELU => small deviation vs. the exact f32 reference.
    max_err = float(jnp.max(jnp.abs(out - ref)))
    assert max_err < 0.25, f"max abs err {max_err} vs f32 reference"
    print("KERNEL_OK")
</pallas_src>

<mosaic_0001>
module attributes {stable_mosaic.version = 11 : i64} {
  func.func @fuse_kernel(%arg0: i32, %arg1: memref<16x128xf32, #tpu.memory_space<vmem>>, %arg2: memref<16x128xf32, #tpu.memory_space<vmem>>, %arg3: memref<16x128xf32, #tpu.memory_space<vmem>>, %arg4: memref<128x128xbf16, #tpu.memory_space<vmem>>, %arg5: memref<128x128xbf16, #tpu.memory_space<vmem>>, %arg6: memref<128x128xbf16, #tpu.memory_space<vmem>>, %arg7: memref<128x128xbf16, #tpu.memory_space<vmem>>, %arg8: memref<128x128xbf16, #tpu.memory_space<vmem>>, %arg9: memref<16x128xf32, #tpu.memory_space<vmem>>) attributes {dimension_semantics = [#tpu.dimension_semantics<arbitrary>], iteration_bounds = array<i64: 1>, scalar_prefetch = 0 : i64, scratch_operands = 0 : i64, tpu.core_type = #tpu.core_type<tc>, window_params = [{transform_indices = @transform_0, window_bounds = array<i64: 16, 128>}, {transform_indices = @transform_1, window_bounds = array<i64: 16, 128>}, {pipeline_mode = #tpu.pipeline_mode<synchronous>, transform_indices = @transform_2, window_bounds = array<i64: 16, 128>}, {pipeline_mode = #tpu.pipeline_mode<synchronous>, transform_indices = @transform_3, window_bounds = array<i64: 128, 128>}, {pipeline_mode = #tpu.pipeline_mode<synchronous>, transform_indices = @transform_4, window_bounds = array<i64: 128, 128>}, {pipeline_mode = #tpu.pipeline_mode<synchronous>, transform_indices = @transform_5, window_bounds = array<i64: 128, 128>}, {pipeline_mode = #tpu.pipeline_mode<synchronous>, transform_indices = @transform_6, window_bounds = array<i64: 128, 128>}, {pipeline_mode = #tpu.pipeline_mode<synchronous>, transform_indices = @transform_7, window_bounds = array<i64: 128, 128>}, {transform_indices = @transform_8, window_bounds = array<i64: 16, 128>}]} {
    %c0 = arith.constant 0 : index
    %c0_0 = arith.constant 0 : index
    %0 = vector.load %arg1[%c0, %c0_0] : memref<16x128xf32, #tpu.memory_space<vmem>>, vector<16x128xf32>
    %c0_1 = arith.constant 0 : index
    %c0_2 = arith.constant 0 : index
    %1 = vector.load %arg2[%c0_1, %c0_2] : memref<16x128xf32, #tpu.memory_space<vmem>>, vector<16x128xf32>
    %c0_3 = arith.constant 0 : index
    %c0_4 = arith.constant 0 : index
    %2 = vector.load %arg3[%c0_3, %c0_4] : memref<16x128xf32, #tpu.memory_space<vmem>>, vector<16x128xf32>
    %cst = arith.constant dense<0.000000e+00> : vector<16xf32>
    %3 = vector.multi_reduction <add>, %0, %cst [1] : vector<16x128xf32> to vector<16xf32>
    %4 = vector.shape_cast %3 : vector<16xf32> to vector<16x1xf32>
    %cst_5 = arith.constant dense<0.000000e+00> : vector<16xf32>
    %5 = vector.multi_reduction <add>, %1, %cst_5 [1] : vector<16x128xf32> to vector<16xf32>
    %6 = vector.shape_cast %5 : vector<16xf32> to vector<16x1xf32>
    %7 = arith.addf %4, %6 : vector<16x1xf32>
    %cst_6 = arith.constant 2.560000e+02 : f32
    %8 = vector.broadcast %cst_6 : f32 to vector<16x1xf32>
    %9 = arith.divf %7, %8 : vector<16x1xf32>
    %10 = vector.broadcast %9 : vector<16x1xf32> to vector<16x128xf32>
    %11 = arith.subf %0, %10 : vector<16x128xf32>
    %12 = vector.broadcast %9 : vector<16x1xf32> to vector<16x128xf32>
    %13 = arith.subf %1, %12 : vector<16x128xf32>
    %14 = arith.mulf %11, %11 : vector<16x128xf32>
    %cst_7 = arith.constant dense<0.000000e+00> : vector<16xf32>
    %15 = vector.multi_reduction <add>, %14, %cst_7 [1] : vector<16x128xf32> to vector<16xf32>
    %16 = vector.shape_cast %15 : vector<16xf32> to vector<16x1xf32>
    %17 = arith.mulf %13, %13 : vector<16x128xf32>
    %cst_8 = arith.constant dense<0.000000e+00> : vector<16xf32>
    %18 = vector.multi_reduction <add>, %17, %cst_8 [1] : vector<16x128xf32> to vector<16xf32>
    %19 = vector.shape_cast %18 : vector<16xf32> to vector<16x1xf32>
    %20 = arith.addf %16, %19 : vector<16x1xf32>
    %cst_9 = arith.constant 2.560000e+02 : f32
    %21 = vector.broadcast %cst_9 : f32 to vector<16x1xf32>
    %22 = arith.divf %20, %21 : vector<16x1xf32>
    %cst_10 = arith.constant 9.99999974E-6 : f32
    %23 = vector.broadcast %cst_10 : f32 to vector<16x1xf32>
    %24 = arith.addf %22, %23 : vector<16x1xf32>
    %25 = math.rsqrt %24 : vector<16x1xf32>
    %26 = vector.broadcast %25 : vector<16x1xf32> to vector<16x128xf32>
    %27 = arith.mulf %11, %26 : vector<16x128xf32>
    %28 = vector.extract_strided_slice %2 {offsets = [0, 0], sizes = [1, 128], strides = [1, 1]} : vector<16x128xf32> to vector<1x128xf32>
    %29 = vector.broadcast %28 : vector<1x128xf32> to vector<16x128xf32>
    %30 = arith.mulf %27, %29 : vector<16x128xf32>
    %31 = vector.extract_strided_slice %2 {offsets = [1, 0], sizes = [1, 128], strides = [1, 1]} : vector<16x128xf32> to vector<1x128xf32>
    %32 = vector.broadcast %31 : vector<1x128xf32> to vector<16x128xf32>
    %33 = arith.addf %30, %32 : vector<16x128xf32>
    %34 = vector.broadcast %25 : vector<16x1xf32> to vector<16x128xf32>
    %35 = arith.mulf %13, %34 : vector<16x128xf32>
    %36 = vector.extract_strided_slice %2 {offsets = [2, 0], sizes = [1, 128], strides = [1, 1]} : vector<16x128xf32> to vector<1x128xf32>
    %37 = vector.broadcast %36 : vector<1x128xf32> to vector<16x128xf32>
    %38 = arith.mulf %35, %37 : vector<16x128xf32>
    %39 = vector.extract_strided_slice %2 {offsets = [3, 0], sizes = [1, 128], strides = [1, 1]} : vector<16x128xf32> to vector<1x128xf32>
    %40 = vector.broadcast %39 : vector<1x128xf32> to vector<16x128xf32>
    %41 = arith.addf %38, %40 : vector<16x128xf32>
    %42 = arith.truncf %33 : vector<16x128xf32> to vector<16x128xbf16>
    %c0_11 = arith.constant 0 : index
    %c0_12 = arith.constant 0 : index
    %43 = vector.load %arg4[%c0_11, %c0_12] : memref<128x128xbf16, #tpu.memory_space<vmem>>, vector<128x128xbf16>
    %cst_13 = arith.constant dense<0.000000e+00> : vector<16x128xf32>
    %44 = tpu.matmul %42, %43, %cst_13 {dimension_numbers = #tpu.dot_dimension_numbers<[1], [0], [0], [1], [0, 0, 1, 1], [], []>} : vector<16x128xbf16>, vector<128x128xbf16>, vector<16x128xf32> -> vector<16x128xf32>
    %45 = arith.truncf %41 : vector<16x128xf32> to vector<16x128xbf16>
    %c0_14 = arith.constant 0 : index
    %c0_15 = arith.constant 0 : index
    %46 = vector.load %arg5[%c0_14, %c0_15] : memref<128x128xbf16, #tpu.memory_space<vmem>>, vector<128x128xbf16>
    %cst_16 = arith.constant dense<0.000000e+00> : vector<16x128xf32>
    %47 = tpu.matmul %45, %46, %cst_16 {dimension_numbers = #tpu.dot_dimension_numbers<[1], [0], [0], [1], [0, 0, 1, 1], [], []>} : vector<16x128xbf16>, vector<128x128xbf16>, vector<16x128xf32> -> vector<16x128xf32>
    %48 = arith.addf %44, %47 : vector<16x128xf32>
    %49 = vector.extract_strided_slice %2 {offsets = [4, 0], sizes = [1, 128], strides = [1, 1]} : vector<16x128xf32> to vector<1x128xf32>
    %50 = vector.broadcast %49 : vector<1x128xf32> to vector<16x128xf32>
    %51 = arith.addf %48, %50 : vector<16x128xf32>
    %52 = arith.mulf %51, %51 : vector<16x128xf32>
    %53 = arith.mulf %51, %52 : vector<16x128xf32>
    %cst_17 = arith.constant 4.471500e-02 : f32
    %54 = vector.broadcast %cst_17 : f32 to vector<16x128xf32>
    %55 = arith.mulf %54, %53 : vector<16x128xf32>
    %56 = arith.addf %51, %55 : vector<16x128xf32>
    %cst_18 = arith.constant 0.797884583 : f32
    %57 = vector.broadcast %cst_18 : f32 to vector<16x128xf32>
    %58 = arith.mulf %57, %56 : vector<16x128xf32>
    %59 = math.tanh %58 : vector<16x128xf32>
    %cst_19 = arith.constant 1.000000e+00 : f32
    %60 = vector.broadcast %cst_19 : f32 to vector<16x128xf32>
    %61 = arith.addf %60, %59 : vector<16x128xf32>
    %cst_20 = arith.constant 5.000000e-01 : f32
    %62 = vector.broadcast %cst_20 : f32 to vector<16x128xf32>
    %63 = arith.mulf %62, %61 : vector<16x128xf32>
    %64 = arith.mulf %51, %63 : vector<16x128xf32>
    %65 = arith.truncf %64 : vector<16x128xf32> to vector<16x128xbf16>
    %c0_21 = arith.constant 0 : index
    %c0_22 = arith.constant 0 : index
    %66 = vector.load %arg6[%c0_21, %c0_22] : memref<128x128xbf16, #tpu.memory_space<vmem>>, vector<128x128xbf16>
    %cst_23 = arith.constant dense<0.000000e+00> : vector<16x128xf32>
    %67 = tpu.matmul %65, %66, %cst_23 {dimension_numbers = #tpu.dot_dimension_numbers<[1], [0], [0], [1], [0, 0, 1, 1], [], []>} : vector<16x128xbf16>, vector<128x128xbf16>, vector<16x128xf32> -> vector<16x128xf32>
    %68 = vector.extract_strided_slice %2 {offsets = [5, 0], sizes = [1, 128], strides = [1, 1]} : vector<16x128xf32> to vector<1x128xf32>
    %69 = vector.broadcast %68 : vector<1x128xf32> to vector<16x128xf32>
    %70 = arith.addf %67, %69 : vector<16x128xf32>
    %71 = arith.addf %70, %0 : vector<16x128xf32>
    %72 = vector.extract_strided_slice %2 {offsets = [6, 0], sizes = [1, 128], strides = [1, 1]} : vector<16x128xf32> to vector<1x128xf32>
    %73 = vector.extract_strided_slice %2 {offsets = [7, 0], sizes = [1, 128], strides = [1, 1]} : vector<16x128xf32> to vector<1x128xf32>
    %cst_24 = arith.constant dense<0.000000e+00> : vector<16xf32>
    %74 = vector.multi_reduction <add>, %71, %cst_24 [1] : vector<16x128xf32> to vector<16xf32>
    %75 = vector.shape_cast %74 : vector<16xf32> to vector<16x1xf32>
    %cst_25 = arith.constant 1.280000e+02 : f32
    %76 = vector.broadcast %cst_25 : f32 to vector<16x1xf32>
    %77 = arith.divf %75, %76 : vector<16x1xf32>
    %78 = vector.broadcast %77 : vector<16x1xf32> to vector<16x128xf32>
    %79 = arith.subf %71, %78 : vector<16x128xf32>
    %80 = arith.mulf %79, %79 : vector<16x128xf32>
    %cst_26 = arith.constant dense<0.000000e+00> : vector<16xf32>
    %81 = vector.multi_reduction <add>, %80, %cst_26 [1] : vector<16x128xf32> to vector<16xf32>
    %82 = vector.shape_cast %81 : vector<16xf32> to vector<16x1xf32>
    %cst_27 = arith.constant 1.280000e+02 : f32
    %83 = vector.broadcast %cst_27 : f32 to vector<16x1xf32>
    %84 = arith.divf %82, %83 : vector<16x1xf32>
    %85 = vector.broadcast %77 : vector<16x1xf32> to vector<16x128xf32>
    %86 = arith.subf %71, %85 : vector<16x128xf32>
    %cst_28 = arith.constant 9.99999974E-6 : f32
    %87 = vector.broadcast %cst_28 : f32 to vector<16x1xf32>
    %88 = arith.addf %84, %87 : vector<16x1xf32>
    %89 = math.rsqrt %88 : vector<16x1xf32>
    %90 = vector.broadcast %89 : vector<16x1xf32> to vector<16x128xf32>
    %91 = arith.mulf %86, %90 : vector<16x128xf32>
    %92 = vector.broadcast %72 : vector<1x128xf32> to vector<16x128xf32>
    %93 = arith.mulf %91, %92 : vector<16x128xf32>
    %94 = vector.broadcast %73 : vector<1x128xf32> to vector<16x128xf32>
    %95 = arith.addf %93, %94 : vector<16x128xf32>
    %96 = arith.truncf %95 : vector<16x128xf32> to vector<16x128xbf16>
    %c0_29 = arith.constant 0 : index
    %c0_30 = arith.constant 0 : index
    %97 = vector.load %arg7[%c0_29, %c0_30] : memref<128x128xbf16, #tpu.memory_space<vmem>>, vector<128x128xbf16>
    %cst_31 = arith.constant dense<0.000000e+00> : vector<16x128xf32>
    %98 = tpu.matmul %96, %97, %cst_31 {dimension_numbers = #tpu.dot_dimension_numbers<[1], [0], [0], [1], [0, 0, 1, 1], [], []>} : vector<16x128xbf16>, vector<128x128xbf16>, vector<16x128xf32> -> vector<16x128xf32>
    %99 = vector.extract_strided_slice %2 {offsets = [8, 0], sizes = [1, 128], strides = [1, 1]} : vector<16x128xf32> to vector<1x128xf32>
    %100 = vector.broadcast %99 : vector<1x128xf32> to vector<16x128xf32>
    %101 = arith.addf %98, %100 : vector<16x128xf32>
    %102 = arith.mulf %101, %101 : vector<16x128xf32>
    %103 = arith.mulf %101, %102 : vector<16x128xf32>
    %cst_32 = arith.constant 4.471500e-02 : f32
    %104 = vector.broadcast %cst_32 : f32 to vector<16x128xf32>
    %105 = arith.mulf %104, %103 : vector<16x128xf32>
    %106 = arith.addf %101, %105 : vector<16x128xf32>
    %cst_33 = arith.constant 0.797884583 : f32
    %107 = vector.broadcast %cst_33 : f32 to vector<16x128xf32>
    %108 = arith.mulf %107, %106 : vector<16x128xf32>
    %109 = math.tanh %108 : vector<16x128xf32>
    %cst_34 = arith.constant 1.000000e+00 : f32
    %110 = vector.broadcast %cst_34 : f32 to vector<16x128xf32>
    %111 = arith.addf %110, %109 : vector<16x128xf32>
    %cst_35 = arith.constant 5.000000e-01 : f32
    %112 = vector.broadcast %cst_35 : f32 to vector<16x128xf32>
    %113 = arith.mulf %112, %111 : vector<16x128xf32>
    %114 = arith.mulf %101, %113 : vector<16x128xf32>
    %115 = arith.truncf %114 : vector<16x128xf32> to vector<16x128xbf16>
    %c0_36 = arith.constant 0 : index
    %c0_37 = arith.constant 0 : index
    %116 = vector.load %arg8[%c0_36, %c0_37] : memref<128x128xbf16, #tpu.memory_space<vmem>>, vector<128x128xbf16>
    %cst_38 = arith.constant dense<0.000000e+00> : vector<16x128xf32>
    %117 = tpu.matmul %115, %116, %cst_38 {dimension_numbers = #tpu.dot_dimension_numbers<[1], [0], [0], [1], [0, 0, 1, 1], [], []>} : vector<16x128xbf16>, vector<128x128xbf16>, vector<16x128xf32> -> vector<16x128xf32>
    %118 = vector.extract_strided_slice %2 {offsets = [9, 0], sizes = [1, 128], strides = [1, 1]} : vector<16x128xf32> to vector<1x128xf32>
    %119 = vector.broadcast %118 : vector<1x128xf32> to vector<16x128xf32>
    %120 = arith.addf %117, %119 : vector<16x128xf32>
    %121 = arith.addf %120, %71 : vector<16x128xf32>
    %122 = vector.extract_strided_slice %2 {offsets = [10, 0], sizes = [1, 128], strides = [1, 1]} : vector<16x128xf32> to vector<1x128xf32>
    %123 = vector.extract_strided_slice %2 {offsets = [11, 0], sizes = [1, 128], strides = [1, 1]} : vector<16x128xf32> to vector<1x128xf32>
    %cst_39 = arith.constant dense<0.000000e+00> : vector<16xf32>
    %124 = vector.multi_reduction <add>, %121, %cst_39 [1] : vector<16x128xf32> to vector<16xf32>
    %125 = vector.shape_cast %124 : vector<16xf32> to vector<16x1xf32>
    %cst_40 = arith.constant 1.280000e+02 : f32
    %126 = vector.broadcast %cst_40 : f32 to vector<16x1xf32>
    %127 = arith.divf %125, %126 : vector<16x1xf32>
    %128 = vector.broadcast %127 : vector<16x1xf32> to vector<16x128xf32>
    %129 = arith.subf %121, %128 : vector<16x128xf32>
    %130 = arith.mulf %129, %129 : vector<16x128xf32>
    %cst_41 = arith.constant dense<0.000000e+00> : vector<16xf32>
    %131 = vector.multi_reduction <add>, %130, %cst_41 [1] : vector<16x128xf32> to vector<16xf32>
    %132 = vector.shape_cast %131 : vector<16xf32> to vector<16x1xf32>
    %cst_42 = arith.constant 1.280000e+02 : f32
    %133 = vector.broadcast %cst_42 : f32 to vector<16x1xf32>
    %134 = arith.divf %132, %133 : vector<16x1xf32>
    %135 = vector.broadcast %127 : vector<16x1xf32> to vector<16x128xf32>
    %136 = arith.subf %121, %135 : vector<16x128xf32>
    %cst_43 = arith.constant 9.99999974E-6 : f32
    %137 = vector.broadcast %cst_43 : f32 to vector<16x1xf32>
    %138 = arith.addf %134, %137 : vector<16x1xf32>
    %139 = math.rsqrt %138 : vector<16x1xf32>
    %140 = vector.broadcast %139 : vector<16x1xf32> to vector<16x128xf32>
    %141 = arith.mulf %136, %140 : vector<16x128xf32>
    %142 = vector.broadcast %122 : vector<1x128xf32> to vector<16x128xf32>
    %143 = arith.mulf %141, %142 : vector<16x128xf32>
    %144 = vector.broadcast %123 : vector<1x128xf32> to vector<16x128xf32>
    %145 = arith.addf %143, %144 : vector<16x128xf32>
    %c0_44 = arith.constant 0 : index
    %c0_45 = arith.constant 0 : index
    %146 = vector.load %arg9[%c0_44, %c0_45] : memref<16x128xf32, #tpu.memory_space<vmem>>, vector<16x128xf32>
    tpu.vector_store %arg9[%c0_44, %c0_45], %145 {strides = array<i32>} : memref<16x128xf32, #tpu.memory_space<vmem>>, vector<16x128xf32>,
    return
  }
  func.func @transform_0(%arg0: i32) -> (i32, i32) {
    %c0_i32 = arith.constant 0 : i32
    %c0_i32_0 = arith.constant 0 : i32
    return %arg0, %c0_i32 : i32, i32
  }
  func.func @transform_1(%arg0: i32) -> (i32, i32) {
    %c0_i32 = arith.constant 0 : i32
    %c0_i32_0 = arith.constant 0 : i32
    return %arg0, %c0_i32 : i32, i32
  }
  func.func @transform_2(%arg0: i32) -> (i32, i32) {
    %c0_i32 = arith.constant 0 : i32
    %c0_i32_0 = arith.constant 0 : i32
    %c0_i32_1 = arith.constant 0 : i32
    return %c0_i32, %c0_i32_0 : i32, i32
  }
  func.func @transform_3(%arg0: i32) -> (i32, i32) {
    %c0_i32 = arith.constant 0 : i32
    %c0_i32_0 = arith.constant 0 : i32
    %c0_i32_1 = arith.constant 0 : i32
    return %c0_i32, %c0_i32_0 : i32, i32
  }
  func.func @transform_4(%arg0: i32) -> (i32, i32) {
    %c0_i32 = arith.constant 0 : i32
    %c0_i32_0 = arith.constant 0 : i32
    %c0_i32_1 = arith.constant 0 : i32
    return %c0_i32, %c0_i32_0 : i32, i32
  }
  func.func @transform_5(%arg0: i32) -> (i32, i32) {
    %c0_i32 = arith.constant 0 : i32
    %c0_i32_0 = arith.constant 0 : i32
    %c0_i32_1 = arith.constant 0 : i32
    return %c0_i32, %c0_i32_0 : i32, i32
  }
  func.func @transform_6(%arg0: i32) -> (i32, i32) {
    %c0_i32 = arith.constant 0 : i32
    %c0_i32_0 = arith.constant 0 : i32
    %c0_i32_1 = arith.constant 0 : i32
    return %c0_i32, %c0_i32_0 : i32, i32
  }
  func.func @transform_7(%arg0: i32) -> (i32, i32) {
    %c0_i32 = arith.constant 0 : i32
    %c0_i32_0 = arith.constant 0 : i32
    %c0_i32_1 = arith.constant 0 : i32
    return %c0_i32, %c0_i32_0 : i32, i32
  }
  func.func @transform_8(%arg0: i32) -> (i32, i32) {
    %c0_i32 = arith.constant 0 : i32
    %c0_i32_0 = arith.constant 0 : i32
    return %arg0, %c0_i32 : i32, i32
  }
}

</mosaic_0001>

<bundles_post_ra>
// kernel: tpu_custom_call.1
= control target key start
LH: loop header
LB: loop body
LE: loop exit
PB: predicated region body
PF: predicated region fallthrough
CT: control target
= control target key end

     0   :  { %13 = vsyncpa [#allocation3], 0  ;;  %s1710_s0 = inlined_call_operand.hbm [shape: f32[16,128], index: 0, kind: input, shape index: {}]   ;;  %s1711_s1 = inlined_call_operand.hbm [shape: f32[16,128], index: 1, kind: input, shape index: {}]   ;;  %s1712_s2 = inlined_call_operand.hbm [shape: f32[16,128], index: 2, kind: input, shape index: {}]   ;;  %s1713_s3 = inlined_call_operand.hbm [shape: bf16[128,128], index: 3, kind: input, shape index: {}]   ;;  %s1714_s4 = inlined_call_operand.hbm [shape: bf16[128,128], index: 4, kind: input, shape index: {}]   ;;  %s1715_s5 = inlined_call_operand.hbm [shape: bf16[128,128], index: 5, kind: input, shape index: {}]   ;;  %s1716_s6 = inlined_call_operand.hbm [shape: bf16[128,128], index: 6, kind: input, shape index: {}]   ;;  %s1717_s7 = inlined_call_operand.hbm [shape: bf16[128,128], index: 7, kind: input, shape index: {}]   ;;  %s1718_s8 = inlined_call_operand.hbm [shape: f32[16,128], index: 8, kind: output, shape index: {}]  }
   0x1   :  { %14 = vsyncpa [#allocation6], 0 }
   0x2   :  { %15 = vsyncpa [#allocation9], 0 }
   0x3   :  { %16 = vsyncpa [#allocation12], 0 }
   0x4   :  { %17 = vsyncpa [#allocation15], 0 }
   0x5   :  { %18 = vsyncpa [#allocation4], 0  ;;  %s1361_s27 = smov [#allocation5]   ;;  %s1362_s29 = smov [#allocation8]  }
   0x6   :  { %s36_s28 = sshll.u32 %s1361_s27, 4  ;;  %s60_s30 = sshll.u32 %s1362_s29, 4  ;;  %s37_s28 = int_to_ptr.vmem [resolvable:$true] %s36_s28  ;;  %s1421_s30 = int_to_ptr.vmem [resolvable:$true] %s60_s30 }
   0x7   :  { %s1151_s11 = scalar_lea.hbm %s1711_s1, 256 }
   0x8   :  { %p1152_p0 = scmp.ne.s32.totalorder %s1711_s1, %s1151_s11  ;;  %p1155_p1 = scmp.lt.u32.totalorder %s1151_s11, %s1711_s1 }
   0xa   :  { %p1157_p2 = pnand %p1155_p1, %p1152_p0 }
   0xc   :  { %1160 = shalt.err (!%p1157_p2)
}
   0xd   :  { %s1161_s16 = scalar_lea.vmem %s37_s28, 256  ;;  %p1166_p4 = scmp.lt.s32.totalorder %s37_s28, %s37_s28 }
   0xe   :  { %p1162_p3 = scmp.ne.s32.totalorder %s37_s28, %s1161_s16  ;;  %p1167_p5 = scmp.lt.s32.totalorder %s1161_s16, %s1161_s16 }
  0x10   :  { %p1168_p6 = por %p1167_p5, %p1166_p4 }
  0x12   :  { %p1169_p7 = pnand %p1168_p6, %p1162_p3 }
  0x14   :  { %1172 = shalt.err (!%p1169_p7)
}
  0x15   :  { %s1363_s17 = smov 128   ;;  %s1364_s18 = smov 8  }
  0x16   :  { %42 = dma.hbm_to_vmem [thread:$0]  %s1711_s1, 256, %s37_s28, [#allocation6], %s1363_s17, %s1363_s17, %s1364_s18  }
  0x17   :  { %s1173_s23 = scalar_lea.hbm %s1713_s3, 1024 }
  0x18   :  { %p1174_p8 = scmp.ne.s32.totalorder %s1713_s3, %s1173_s23  ;;  %p1177_p9 = scmp.lt.u32.totalorder %s1173_s23, %s1713_s3 }
  0x1a   :  { %p1179_p10 = pnand %p1177_p9, %p1174_p8 }
  0x1c   :  { %1182 = shalt.err (!%p1179_p10)
}
  0x1d   :  { %s1183_s29 = scalar_lea.vmem %s1421_s30, 1024  ;;  %p1188_p12 = scmp.lt.s32.totalorder %s1421_s30, %s1421_s30 }
  0x1e   :  { %p1184_p11 = scmp.ne.s32.totalorder %s1421_s30, %s1183_s29  ;;  %p1189_p13 = scmp.lt.s32.totalorder %s1183_s29, %s1183_s29 }
  0x20   :  { %p1190_p0 = por %p1189_p13, %p1188_p12 }
  0x22   :  { %p1191_p1 = pnand %p1190_p0, %p1184_p11 }
  0x24   :  { %1194 = shalt.err (!%p1191_p1)
}
  0x25   :  { %s1365_s1 = smov 64   ;;  %s1366_s28 = smov 4  }
  0x26   :  { %66 = dma.hbm_to_vmem [thread:$0]  %s1713_s3, 1024, %s1421_s30, [#allocation9], %s1365_s1, %s1365_s1, %s1366_s28  }
  0x27   :  { %s1367_s11 = smov [#allocation11]   ;;  %s1368_s13 = smov [#allocation2]  }
  0x28   :  { %s84_s12 = sshll.u32 %s1367_s11, 4  ;;  %s24_s14 = sshll.u32 %s1368_s13, 4  ;;  %s85_s12 = int_to_ptr.vmem [resolvable:$true] %s84_s12  ;;  %s1458_s14 = int_to_ptr.vmem [resolvable:$true] %s24_s14 }
  0x29   :  { %s1195_s19 = scalar_lea.hbm %s1715_s5, 1024 }
  0x2a   :  { %p1196_p2 = scmp.ne.s32.totalorder %s1715_s5, %s1195_s19  ;;  %p1199_p3 = scmp.lt.u32.totalorder %s1195_s19, %s1715_s5 }
  0x2c   :  { %p1201_p4 = pnand %p1199_p3, %p1196_p2 }
  0x2e   :  { %1204 = shalt.err (!%p1201_p4)
}
  0x2f   :  { %s1205_s3 = scalar_lea.vmem %s85_s12, 1024  ;;  %p1210_p6 = scmp.lt.s32.totalorder %s85_s12, %s85_s12 }
  0x30   :  { %p1206_p5 = scmp.ne.s32.totalorder %s85_s12, %s1205_s3  ;;  %p1211_p7 = scmp.lt.s32.totalorder %s1205_s3, %s1205_s3 }
  0x32   :  { %p1212_p8 = por %p1211_p7, %p1210_p6 }
  0x34   :  { %p1213_p9 = pnand %p1212_p8, %p1206_p5 }
  0x36   :  { %1216 = shalt.err (!%p1213_p9)
}
  0x37   :  { %90 = dma.hbm_to_vmem [thread:$0]  %s1715_s5, 1024, %s85_s12, [#allocation12], %s1365_s1, %s1365_s1, %s1366_s28  }
  0x38   :  { %s1217_s27 = scalar_lea.hbm %s1710_s0, 256 }
  0x39   :  { %p1218_p10 = scmp.ne.s32.totalorder %s1710_s0, %s1217_s27  ;;  %p1221_p11 = scmp.lt.u32.totalorder %s1217_s27, %s1710_s0 }
  0x3b   :  { %p1223_p12 = pnand %p1221_p11, %p1218_p10 }
  0x3d   :  { %1226 = shalt.err (!%p1223_p12)
}
  0x3e   :  { %s1227_s13 = scalar_lea.vmem %s1458_s14, 256  ;;  %p1232_p0 = scmp.lt.s32.totalorder %s1458_s14, %s1458_s14 }
  0x3f   :  { %p1228_p13 = scmp.ne.s32.totalorder %s1458_s14, %s1227_s13  ;;  %p1233_p1 = scmp.lt.s32.totalorder %s1227_s13, %s1227_s13 }
  0x41   :  { %p1234_p2 = por %p1233_p1, %p1232_p0 }
  0x43   :  { %p1235_p3 = pnand %p1234_p2, %p1228_p13 }
  0x45   :  { %1238 = shalt.err (!%p1235_p3)
}
  0x46   :  { %30 = dma.hbm_to_vmem [thread:$0]  %s1710_s0, 256, %s1458_s14, [#allocation3], %s1363_s17, %s1363_s17, %s1364_s18  }
  0x47   :  { %s1369_s15 = smov [#allocation7]   ;;  %s1370_s19 = smov [#allocation10]  }
  0x48   :  { %s48_s16 = sshll.u32 %s1369_s15, 4  ;;  %s72_s20 = sshll.u32 %s1370_s19, 4  ;;  %s49_s16 = int_to_ptr.vmem [resolvable:$true] %s48_s16  ;;  %s1495_s20 = int_to_ptr.vmem [resolvable:$true] %s72_s20 }
  0x49   :  { %s1239_s23 = scalar_lea.hbm %s1712_s2, 256 }
  0x4a   :  { %p1240_p4 = scmp.ne.s32.totalorder %s1712_s2, %s1239_s23  ;;  %p1243_p5 = scmp.lt.u32.totalorder %s1239_s23, %s1712_s2 }
  0x4c   :  { %p1245_p6 = pnand %p1243_p5, %p1240_p4 }
  0x4e   :  { %1248 = shalt.err (!%p1245_p6)
}
  0x4f   :  { %s1249_s0 = scalar_lea.vmem %s49_s16, 256  ;;  %p1254_p8 = scmp.lt.s32.totalorder %s49_s16, %s49_s16 }
  0x50   :  { %p1250_p7 = scmp.ne.s32.totalorder %s49_s16, %s1249_s0  ;;  %p1255_p9 = scmp.lt.s32.totalorder %s1249_s0, %s1249_s0 }
  0x52   :  { %p1256_p10 = por %p1255_p9, %p1254_p8 }
  0x54   :  { %p1257_p11 = pnand %p1256_p10, %p1250_p7 }
  0x56   :  { %1260 = shalt.err (!%p1257_p11)
}
  0x57   :  { %54 = dma.hbm_to_vmem [thread:$0]  %s1712_s2, 256, %s49_s16, [#allocation6], %s1363_s17, %s1363_s17, %s1364_s18  }
  0x58   :  { %s1261_s9 = scalar_lea.hbm %s1714_s4, 1024 }
  0x59   :  { %p1262_p12 = scmp.ne.s32.totalorder %s1714_s4, %s1261_s9  ;;  %p1265_p13 = scmp.lt.u32.totalorder %s1261_s9, %s1714_s4 }
  0x5b   :  { %p1267_p0 = pnand %p1265_p13, %p1262_p12 }
  0x5d   :  { %1270 = shalt.err (!%p1267_p0)
}
  0x5e   :  { %s1271_s12 = scalar_lea.vmem %s1495_s20, 1024  ;;  %p1276_p2 = scmp.lt.s32.totalorder %s1495_s20, %s1495_s20 }
  0x5f   :  { %p1272_p1 = scmp.ne.s32.totalorder %s1495_s20, %s1271_s12  ;;  %p1277_p3 = scmp.lt.s32.totalorder %s1271_s12, %s1271_s12 }
  0x61   :  { %p1278_p4 = por %p1277_p3, %p1276_p2 }
  0x63   :  { %p1279_p5 = pnand %p1278_p4, %p1272_p1 }
  0x65   :  { %1282 = shalt.err (!%p1279_p5)
}
  0x66   :  { %78 = dma.hbm_to_vmem [thread:$0]  %s1714_s4, 1024, %s1495_s20, [#allocation9], %s1365_s1, %s1365_s1, %s1366_s28  }
  0x67   :  { %s1371_s16 = smov [#allocation13]   ;;  %s1372_s21 = smov [#allocation14]  }
  0x68   :  { %s96_s19 = sshll.u32 %s1371_s16, 4  ;;  %s108_s22 = sshll.u32 %s1372_s21, 4  ;;  %s97_s19 = int_to_ptr.vmem [resolvable:$true] %s96_s19  ;;  %s1532_s22 = int_to_ptr.vmem [resolvable:$true] %s108_s22 }
  0x69   :  { %s1283_s30 = scalar_lea.hbm %s1716_s6, 1024 }
  0x6a   :  { %p1284_p6 = scmp.ne.s32.totalorder %s1716_s6, %s1283_s30  ;;  %p1287_p7 = scmp.lt.u32.totalorder %s1283_s30, %s1716_s6 }
  0x6c   :  { %p1289_p8 = pnand %p1287_p7, %p1284_p6 }
  0x6e   :  { %1292 = shalt.err (!%p1289_p8)
}
  0x6f   :  { %s1293_s4 = scalar_lea.vmem %s97_s19, 1024  ;;  %p1298_p10 = scmp.lt.s32.totalorder %s97_s19, %s97_s19 }
  0x70   :  { %p1294_p9 = scmp.ne.s32.totalorder %s97_s19, %s1293_s4  ;;  %p1299_p11 = scmp.lt.s32.totalorder %s1293_s4, %s1293_s4 }
  0x72   :  { %p1300_p12 = por %p1299_p11, %p1298_p10 }
  0x74   :  { %p1301_p13 = pnand %p1300_p12, %p1294_p9 }
  0x76   :  { %1304 = shalt.err (!%p1301_p13)
}
  0x77   :  { %102 = dma.hbm_to_vmem [thread:$0]  %s1716_s6, 1024, %s97_s19, [#allocation12], %s1365_s1, %s1365_s1, %s1366_s28  }
  0x78   :  { %s1305_s9 = scalar_lea.hbm %s1717_s7, 1024 }
  0x79   :  { %p1306_p0 = scmp.ne.s32.totalorder %s1717_s7, %s1305_s9  ;;  %p1309_p1 = scmp.lt.u32.totalorder %s1305_s9, %s1717_s7 }
  0x7b   :  { %p1311_p2 = pnand %p1309_p1, %p1306_p0 }
  0x7d   :  { %1314 = shalt.err (!%p1311_p2)
}
  0x7e   :  { %s1315_s12 = scalar_lea.vmem %s1532_s22, 1024  ;;  %p1320_p4 = scmp.lt.s32.totalorder %s1532_s22, %s1532_s22 }
  0x7f   :  { %p1316_p3 = scmp.ne.s32.totalorder %s1532_s22, %s1315_s12  ;;  %p1321_p5 = scmp.lt.s32.totalorder %s1315_s12, %s1315_s12 }
  0x81   :  { %p1322_p6 = por %p1321_p5, %p1320_p4 }
  0x83   :  { %p1323_p7 = pnand %p1322_p6, %p1316_p3 }
  0x85   :  { %1326 = shalt.err (!%p1323_p7)
}
  0x86   :  { %114 = dma.hbm_to_vmem [thread:$0]  %s1717_s7, 1024, %s1532_s22, [#allocation15], %s1365_s1, %s1365_s1, %s1366_s28  }
  0x87   :  { %1349 = dma.done.wait [#allocation3], 256  }
  0x88   :  { %1350 = vsyncadd [#allocation3], 4294967040 }
  0x89   :  { %1351 = dma.done.wait [#allocation6], 512  }
  0x8a   :  { %1352 = vsyncadd [#allocation6], 4294966784 }
  0x8b   :  { %1353 = dma.done.wait [#allocation9], 2048  }
  0x8c   :  { %1354 = vsyncadd [#allocation9], 4294965248 }
  0x8d   :  { %1355 = dma.done.wait [#allocation12], 2048  }
  0x8e   :  { %1356 = vsyncadd [#allocation12], 4294965248 }
  0x8f   :  { %1357 = dma.done.wait [#allocation15], 1024  }
  0x90   :  { %1358 = vsyncadd [#allocation15], 4294966272  ;;  %v142_v0 = vld [vmem:[#allocation5] sm:$0xff]  ;;  %v1569_v1 = vld [vmem:[#allocation2] sm:$0xff]  ;;  %v1373_v22 = vmov 0.0   ;;  %vm1374_vm0 = vmmov 0   ;;  %v185_v45 = vlaneseq }
  0x91   :  { %v143_v2 = vld [vmem:[#allocation5 + $0x8] sm:$0xff]  ;;  %150 = vadd.xlane.f32.xlu1 %v142_v0  ;;  %146 = vadd.xlane.f32.xlu0 %v1569_v1  ;;  %v1572_v3 = vld [vmem:[#allocation2 + $0x8] sm:$0xff]  ;;  %v1091_v20 = vld [vmem:[#allocation10] sm:$0xff]   ;;  %s1375_s7 = smov [#allocation16]  }
  0x92   :  { %v1092_v21 = vld [vmem:[#allocation8] sm:$0xff]   ;;  %976 = vmatprep.subr.bf16.mxu0 %v1373_v22  ;;  %996 = vmatprep.subr.bf16.mxu1 %v1373_v22  ;;  %v1093_v23 = vld [vmem:[#allocation10 + $0x8] sm:$0xff]   ;;  %v1095_v25 = vld [vmem:[#allocation10 + $0x10] sm:$0xff]   ;;  %v1615_v48 = vshrl.u32 %v185_v45, 7  ;;  %s875_s1 = sshll.u32 %s1375_s7, 4  ;;  %s876_s1 = int_to_ptr.vmem [resolvable:$true] %s875_s1 }
  0x93   :  { %977 = vmatpush3.bf16.msra.mxu0 %v1091_v20  ;;  %997 = vmatpush3.bf16.msra.mxu1 %v1092_v21  ;;  %v1094_v24 = vld [vmem:[#allocation8 + $0x8] sm:$0xff]   ;;  %v1096_v26 = vld [vmem:[#allocation8 + $0x10] sm:$0xff]   ;;  %v1097_v27 = vld [vmem:[#allocation10 + $0x18] sm:$0xff]   ;;  %s1327_s28 = scalar_lea.vmem %s876_s1, 256  ;;  %p1332_p9 = scmp.lt.s32.totalorder %s876_s1, %s876_s1 }
  0x94   :  { %978 = vmatprep.subr.bf16.mxu0 %v1373_v22  ;;  %998 = vmatprep.subr.bf16.mxu1 %v1373_v22  ;;  %v1098_v28 = vld [vmem:[#allocation8 + $0x18] sm:$0xff]   ;;  %v1099_v29 = vld [vmem:[#allocation10 + $0x20] sm:$0xff]   ;;  %v1101_v31 = vld [vmem:[#allocation10 + $0x28] sm:$0xff]   ;;  %v201_v49 = vsub.s32 2, %v1615_v48  ;;  %v187_v50 = vsub.s32 0, %v1615_v48  ;;  %v207_v53 = vsub.s32 3, %v1615_v48  ;;  %p1328_p8 = scmp.ne.s32.totalorder %s876_s1, %s1327_s28  ;;  %p1333_p10 = scmp.lt.s32.totalorder %s1327_s28, %s1327_s28 }
  0x95   :  { %152 = vadd.xlane.f32.xlu1 %v143_v2  ;;  %148 = vadd.xlane.f32.xlu0 %v1572_v3  ;;  %v1100_v30 = vld [vmem:[#allocation8 + $0x20] sm:$0xff]   ;;  %v1102_v32 = vld [vmem:[#allocation8 + $0x28] sm:$0xff]   ;;  %v1103_v33 = vld [vmem:[#allocation10 + $0x30] sm:$0xff]   ;;  %v193_v54 = vsub.s32 1, %v1615_v48  ;;  %v425_v20 = vsub.s32 4, %v1615_v48 }
  0x96   :  { %992 = vmatprep.mubr.msk.bf16.mxu0 %vm1374_vm0, %v1373_v22  ;;  %1012 = vmatprep.mubr.msk.bf16.mxu1 %vm1374_vm0, %v1373_v22  ;;  %v1104_v34 = vld [vmem:[#allocation8 + $0x30] sm:$0xff]   ;;  %v1105_v35 = vld [vmem:[#allocation10 + $0x38] sm:$0xff]   ;;  %p1334_p11 = por %p1333_p10, %p1332_p9 }
  0x97   :  { %979 = vmatpush3.bf16.msra.mxu0 %v1093_v23  ;;  %999 = vmatpush3.bf16.msra.mxu1 %v1094_v24  ;;  %v1106_v36 = vld [vmem:[#allocation8 + $0x38] sm:$0xff]   ;;  %v1619_v51 = vld [vmem:[#allocation7] sm:$0xff] }
  0x98   :  { %980 = vmatprep.subr.bf16.mxu0 %v1373_v22  ;;  %1000 = vmatprep.subr.bf16.mxu1 %v1373_v22  ;;  %v202_v56 = vrot.slane %v1619_v51, %v201_v49  ;;  %v188_v58 = vrot.slane %v1619_v51, %v187_v50  ;;  %v208_v60 = vrot.slane %v1619_v51, %v207_v53  ;;  %p1335_p12 = pnand %p1334_p11, %p1328_p8 }
  0x99   :  { %v194_v61 = vrot.slane %v1619_v51, %v193_v54  ;;  %v426_v21 = vrot.slane %v1619_v51, %v425_v20  ;;  %v1121_v20 = vld [vmem:[#allocation13 + $0x30] sm:$0xff]  }
  0x9b   :  { %981 = vmatpush3.bf16.msra.mxu0 %v1095_v25  ;;  %1001 = vmatpush3.bf16.msra.mxu1 %v1096_v26 }
  0x9c   :  { %982 = vmatprep.subr.bf16.mxu0 %v1373_v22  ;;  %1002 = vmatprep.subr.bf16.mxu1 %v1373_v22 }
  0x9f   :  { %983 = vmatpush3.bf16.msra.mxu0 %v1097_v27  ;;  %1003 = vmatpush3.bf16.msra.mxu1 %v1098_v28 }
  0xa0   :  { %984 = vmatprep.subr.bf16.mxu0 %v1373_v22  ;;  %1004 = vmatprep.subr.bf16.mxu1 %v1373_v22 }
  0xa3   :  { %985 = vmatpush3.bf16.msra.mxu0 %v1099_v29  ;;  %1005 = vmatpush3.bf16.msra.mxu1 %v1100_v30 }
  0xa4   :  { %986 = vmatprep.subr.bf16.mxu0 %v1373_v22  ;;  %1006 = vmatprep.subr.bf16.mxu1 %v1373_v22 }
  0xa7   :  { %987 = vmatpush3.bf16.msra.mxu0 %v1101_v31  ;;  %1007 = vmatpush3.bf16.msra.mxu1 %v1102_v32 }
  0xa8   :  { %988 = vmatprep.subr.bf16.mxu0 %v1373_v22  ;;  %1008 = vmatprep.subr.bf16.mxu1 %v1373_v22 }
  0xab   :  { %989 = vmatpush3.bf16.msra.mxu0 %v1103_v33  ;;  %1009 = vmatpush3.bf16.msra.mxu1 %v1104_v34 }
  0xac   :  { %990 = vmatprep.subr.bf16.mxu0 %v1373_v22  ;;  %1010 = vmatprep.subr.bf16.mxu1 %v1373_v22 }
  0xaf   :  { %991 = vmatpush3.bf16.msra.mxu0 %v1105_v35  ;;  %1011 = vmatpush3.bf16.msra.mxu1 %v1106_v36 }
  0xb0   :  { %1016 = vmatprep.subr.bf16.mxu0 %v1373_v22  ;;  %1036 = vmatprep.subr.bf16.mxu1 %v1373_v22 }
 0x11e   :  { %v151_v4 = vpop.xlane.xlu1 %150  ;;  %v147_v5 = vpop.xlane.xlu0 %146 }
 0x11f   :  { %v154_v6 = vadd.f32 %v151_v4, %v147_v5 }
 0x121   :  { %v157_v7 = vmul.f32 0.00390625, %v154_v6 }
 0x122   :  { %v153_v8 = vpop.xlane.xlu1 %152  ;;  %v149_v9 = vpop.xlane.xlu0 %148 }
 0x123   :  { %v1576_v10 = vsub.f32 %v1569_v1, %v157_v7  ;;  %v155_v11 = vadd.f32 %v153_v8, %v149_v9  ;;  %v1578_v12 = vsub.f32 %v142_v0, %v157_v7 }
 0x125   :  { %v158_v13 = vmul.f32 0.00390625, %v155_v11  ;;  %v163_v14 = vmul.f32 %v1576_v10, %v1576_v10  ;;  %v169_v17 = vmul.f32 %v1578_v12, %v1578_v12 }
 0x127   :  { %v1583_v15 = vsub.f32 %v1572_v3, %v158_v13  ;;  %165 = vadd.xlane.f32.xlu0 %v163_v14  ;;  %v1585_v16 = vsub.f32 %v143_v2, %v158_v13  ;;  %v1108_v13 = vld [vmem:[#allocation11 + $0x8] sm:$0xff]   ;;  %v1109_v14 = vld [vmem:[#allocation11 + $0x10] sm:$0xff]  }
 0x129   :  { %v164_v18 = vmul.f32 %v1583_v15, %v1583_v15  ;;  %v170_v19 = vmul.f32 %v1585_v16, %v1585_v16 }
 0x12b   :  { %171 = vadd.xlane.f32.xlu0 %v169_v17  ;;  %167 = vadd.xlane.f32.xlu1 %v164_v18  ;;  %v1112_v17 = vld [vmem:[#allocation11 + $0x28] sm:$0xff]   ;;  %v1113_v18 = vld [vmem:[#allocation11 + $0x30] sm:$0xff]  }
 0x12f   :  { %173 = vadd.xlane.f32.xlu1 %v170_v19  ;;  %v1114_v19 = vld [vmem:[#allocation11 + $0x38] sm:$0xff]  }
 0x1b4   :  { %v166_v37 = vpop.xlane.xlu0 %165 }
 0x1b8   :  { %v168_v38 = vpop.xlane.xlu1 %167  ;;  %v172_v39 = vpop.xlane.xlu0 %171 }
 0x1b9   :  { %v175_v40 = vadd.f32 %v172_v39, %v166_v37 }
 0x1bb   :  { %v177_v41 = vmul.f32 0.00390625, %v175_v40 }
 0x1bc   :  { %v174_v42 = vpop.xlane.xlu1 %173 }
 0x1bd   :  { %v179_v43 = vadd.f32 1e-05, %v177_v41  ;;  %v176_v44 = vadd.f32 %v174_v42, %v168_v38 }
 0x1bf   :  { %1131 = vrsqrt.f32 %v179_v43  ;;  %v178_v46 = vmul.f32 0.00390625, %v176_v44 }
 0x1c1   :  { %v180_v47 = vadd.f32 1e-05, %v178_v46 }
 0x1c3   :  { %1133 = vrsqrt.f32 %v180_v47 }
 0x1c9   :  { %v1132_v52 = vpop.eup %1131 }
 0x1ca   :  { %v197_v55 = vmul.f32 %v1132_v52, %v1578_v12  ;;  %v183_v57 = vmul.f32 %v1132_v52, %v1576_v10  ;;  %v1107_v12 = vld [vmem:[#allocation11] sm:$0xff]  }
 0x1cc   :  { %v203_v63 = vmul.f32 %v202_v56, %v197_v55  ;;  %v189_v2 = vmul.f32 %v188_v58, %v183_v57 }
 0x1cd   :  { %v1134_v59 = vpop.eup %1133 }
 0x1ce   :  { %v198_v62 = vmul.f32 %v1134_v59, %v1585_v16  ;;  %v184_v0 = vmul.f32 %v1134_v59, %v1583_v15  ;;  %v209_v6 = vadd.f32 %v208_v60, %v203_v63  ;;  %v195_v8 = vadd.f32 %v194_v61, %v189_v2  ;;  %v1110_v15 = vld [vmem:[#allocation11 + $0x18] sm:$0xff]   ;;  %v1111_v16 = vld [vmem:[#allocation11 + $0x20] sm:$0xff]  }
 0x1d0   :  { %v204_v4 = vmul.f32 %v202_v56, %v198_v62  ;;  %v190_v5 = vmul.f32 %v188_v58, %v184_v0 }
 0x1d2   :  { %v210_v7 = vadd.f32 %v208_v60, %v204_v4  ;;  %v196_v9 = vadd.f32 %v194_v61, %v190_v5  ;;  %v466_v60 = vsub.s32 5, %v1615_v48 }
 0x1d4   :  { %v228_v10 = vpack.c.bf16 %v210_v7, %v209_v6  ;;  %v211_v11 = vpack.c.bf16 %v196_v9, %v195_v8  ;;  %v467_v61 = vrot.slane %v1619_v51, %v466_v60  ;;  %v1115_v8 = vld [vmem:[#allocation13] sm:$0xff]   ;;  %v1116_v9 = vld [vmem:[#allocation13 + $0x8] sm:$0xff]  }
 0x1d6   :  { %993 = vmatmul.mubr.bf16.vlgmr.msra.gmra.mrb[0].mxu0 %v228_v10  ;;  %1013 = vmatmul.mubr.bf16.vlgmr.msra.gmra.mrb[0].mxu1 %v211_v11 }
 0x1d7   :  { %1032 = vmatprep.mubr.msk.bf16.mxu0 %vm1374_vm0, %v1373_v22  ;;  %1052 = vmatprep.mubr.msk.bf16.mxu1 %vm1374_vm0, %v1373_v22 }
 0x1d8   :  { %1017 = vmatpush3.bf16.msra.mxu0 %v1107_v12  ;;  %1037 = vmatpush3.bf16.msra.mxu1 %v1115_v8 }
 0x1d9   :  { %1018 = vmatprep.subr.bf16.mxu0 %v1373_v22  ;;  %1038 = vmatprep.subr.bf16.mxu1 %v1373_v22 }
 0x1dc   :  { %1019 = vmatpush3.bf16.msra.mxu0 %v1108_v13  ;;  %1039 = vmatpush3.bf16.msra.mxu1 %v1116_v9 }
 0x1dd   :  { %1020 = vmatprep.subr.bf16.mxu0 %v1373_v22  ;;  %1040 = vmatprep.subr.bf16.mxu1 %v1373_v22 }
 0x1e0   :  { %1021 = vmatpush3.bf16.msra.mxu0 %v1109_v14 }
 0x1e1   :  { %1022 = vmatprep.subr.bf16.mxu0 %v1373_v22 }
 0x1e4   :  { %1023 = vmatpush3.bf16.msra.mxu0 %v1110_v15 }
 0x1e5   :  { %1024 = vmatprep.subr.bf16.mxu0 %v1373_v22 }
 0x1e8   :  { %1025 = vmatpush3.bf16.msra.mxu0 %v1111_v16  ;;  %v1117_v16 = vld [vmem:[#allocation13 + $0x10] sm:$0xff]  }
 0x1e9   :  { %1026 = vmatprep.subr.bf16.mxu0 %v1373_v22  ;;  %1041 = vmatpush3.bf16.msra.mxu1 %v1117_v16 }
 0x1ea   :  { %1042 = vmatprep.subr.bf16.mxu1 %v1373_v22 }
 0x1ec   :  { %1027 = vmatpush3.bf16.msra.mxu0 %v1112_v17  ;;  %v1118_v17 = vld [vmem:[#allocation13 + $0x18] sm:$0xff]  }
 0x1ed   :  { %1028 = vmatprep.subr.bf16.mxu0 %v1373_v22  ;;  %1043 = vmatpush3.bf16.msra.mxu1 %v1118_v17 }
 0x1ee   :  { %1044 = vmatprep.subr.bf16.mxu1 %v1373_v22 }
 0x1f0   :  { %1029 = vmatpush3.bf16.msra.mxu0 %v1113_v18  ;;  %v1119_v18 = vld [vmem:[#allocation13 + $0x20] sm:$0xff]  }
 0x1f1   :  { %1030 = vmatprep.subr.bf16.mxu0 %v1373_v22  ;;  %1045 = vmatpush3.bf16.msra.mxu1 %v1119_v18 }
 0x1f2   :  { %1046 = vmatprep.subr.bf16.mxu1 %v1373_v22 }
 0x1f4   :  { %1031 = vmatpush3.bf16.msra.mxu0 %v1114_v19  ;;  %v1120_v19 = vld [vmem:[#allocation13 + $0x28] sm:$0xff]  }
 0x1f5   :  { %1056 = vmatprep.subr.bf16.mxu0 %v1373_v22  ;;  %1047 = vmatpush3.bf16.msra.mxu1 %v1120_v19 }
 0x1f6   :  { %1048 = vmatprep.subr.bf16.mxu1 %v1373_v22 }
 0x1f9   :  { %1049 = vmatpush3.bf16.msra.mxu1 %v1121_v20 }
 0x1fa   :  { %1050 = vmatprep.subr.bf16.mxu1 %v1373_v22 }
 0x2a9   :  { %v327_v23 = vpop.f32.mrb[0].mxu0  ;;  %v416_v24 = vpop.f32.mrb[0].mxu1 }
 0x2aa   :  { %v417_v25 = vadd.f32 %v416_v24, %v327_v23  ;;  %v994_v26 = vpop.f32.mrb[1].mxu0  ;;  %v1014_v27 = vpop.f32.mrb[1].mxu1 }
 0x2ab   :  { %v330_v28 = vpop.f32.mrb[2].mxu0  ;;  %v419_v29 = vpop.f32.mrb[2].mxu1 }
 0x2ac   :  { %v427_v30 = vadd.f32 %v426_v21, %v417_v25  ;;  %v420_v31 = vadd.f32 %v419_v29, %v330_v28  ;;  %v995_v32 = vpop.f32.mrb[3].mxu0  ;;  %v1015_v33 = vpop.f32.mrb[3].mxu1  ;;  %v584_v29 = vsub.s32 6, %v1615_v48 }
 0x2ae   :  { %v429_v34 = vmul.f32 %v427_v30, %v427_v30  ;;  %v428_v35 = vadd.f32 %v426_v21, %v420_v31  ;;  %v1122_v21 = vld [vmem:[#allocation13 + $0x38] sm:$0xff]   ;;  %v590_v31 = vsub.s32 7, %v1615_v48 }
 0x2af   :  { %1051 = vmatpush3.bf16.msra.mxu1 %v1122_v21 }
 0x2b0   :  { %v431_v36 = vmul.f32 %v429_v34, %v427_v30  ;;  %v430_v37 = vmul.f32 %v428_v35, %v428_v35 }
 0x2b2   :  { %v433_v38 = vmul.f32 0.044715, %v431_v36  ;;  %v432_v39 = vmul.f32 %v430_v37, %v428_v35  ;;  %v591_v37 = vrot.slane %v1619_v51, %v590_v31 }
 0x2b4   :  { %v435_v40 = vadd.f32 %v433_v38, %v427_v30  ;;  %v434_v41 = vmul.f32 0.044715, %v432_v39 }
 0x2b6   :  { %v437_v42 = vmul.f32 0.7978846, %v435_v40  ;;  %v436_v43 = vadd.f32 %v434_v41, %v428_v35 }
 0x2b8   :  { %1135 = vtanh.f32 %v437_v42  ;;  %v438_v44 = vmul.f32 0.7978846, %v436_v43  ;;  %v1123_v42 = vld [vmem:[#allocation14] sm:$0xff]   ;;  %v1124_v43 = vld [vmem:[#allocation14 + $0x8] sm:$0xff]  }
 0x2ba   :  { %1137 = vtanh.f32 %v438_v44  ;;  %v1125_v44 = vld [vmem:[#allocation14 + $0x10] sm:$0xff]  }
 0x2c2   :  { %v1136_v45 = vpop.eup %1135 }
 0x2c3   :  { %v441_v46 = vadd.f32 1.0, %v1136_v45  ;;  %v1126_v45 = vld [vmem:[#allocation14 + $0x18] sm:$0xff]  }
 0x2c4   :  { %v1138_v47 = vpop.eup %1137 }
 0x2c5   :  { %v442_v52 = vadd.f32 1.0, %v1138_v47  ;;  %v443_v55 = vmul.f32 0.5, %v441_v46  ;;  %v1128_v46 = vld [vmem:[#allocation14 + $0x28] sm:$0xff]   ;;  %v1129_v47 = vld [vmem:[#allocation14 + $0x30] sm:$0xff]  }
 0x2c7   :  { %v444_v56 = vmul.f32 0.5, %v442_v52  ;;  %v445_v57 = vmul.f32 %v443_v55, %v427_v30  ;;  %v585_v30 = vrot.slane %v1619_v51, %v584_v29  ;;  %v1127_v51 = vld [vmem:[#allocation14 + $0x20] sm:$0xff]   ;;  %v1130_v52 = vld [vmem:[#allocation14 + $0x38] sm:$0xff]  }
 0x2c8   :  { %v145_v55 = vld [vmem:[#allocation7 + $0x8] sm:$0xff] }
 0x2c9   :  { %v446_v58 = vmul.f32 %v444_v56, %v428_v35  ;;  %v614_v56 = vrot.slane %v145_v55, %v187_v50  ;;  %v742_v18 = vrot.slane %v145_v55, %v193_v54 }
 0x2cb   :  { %v447_v59 = vpack.c.bf16 %v446_v58, %v445_v57 }
 0x2cd   :  { %1033 = vmatmul.mubr.bf16.vlgmr.msra.gmra.mrb[4].mxu0 %v447_v59 }
 0x2ce   :  { %1072 = vmatprep.mubr.msk.bf16.mxu0 %vm1374_vm0, %v1373_v22  ;;  %1057 = vmatpush3.bf16.msra.mxu0 %v1123_v42  ;;  %v865_v42 = vrot.slane %v145_v55, %v207_v53 }
 0x2cf   :  { %1058 = vmatprep.subr.bf16.mxu0 %v1373_v22 }
 0x2d2   :  { %1059 = vmatpush3.bf16.msra.mxu0 %v1124_v43 }
 0x2d3   :  { %1060 = vmatprep.subr.bf16.mxu0 %v1373_v22 }
 0x2d6   :  { %1061 = vmatpush3.bf16.msra.mxu0 %v1125_v44 }
 0x2d7   :  { %1062 = vmatprep.subr.bf16.mxu0 %v1373_v22 }
 0x2da   :  { %1063 = vmatpush3.bf16.msra.mxu0 %v1126_v45 }
 0x2db   :  { %1064 = vmatprep.subr.bf16.mxu0 %v1373_v22 }
 0x2de   :  { %1065 = vmatpush3.bf16.msra.mxu0 %v1127_v51 }
 0x2df   :  { %1066 = vmatprep.subr.bf16.mxu0 %v1373_v22 }
 0x2e2   :  { %1067 = vmatpush3.bf16.msra.mxu0 %v1128_v46 }
 0x2e3   :  { %1068 = vmatprep.subr.bf16.mxu0 %v1373_v22 }
 0x2e6   :  { %1069 = vmatpush3.bf16.msra.mxu0 %v1129_v47 }
 0x2e7   :  { %1070 = vmatprep.subr.bf16.mxu0 %v1373_v22 }
 0x2ea   :  { %1071 = vmatpush3.bf16.msra.mxu0 %v1130_v52 }
 0x3a0   :  { %v550_v62 = vpop.f32.mrb[4].mxu0 }
 0x3a1   :  { %v551_v63 = vadd.f32 %v550_v62, %v467_v61  ;;  %v1034_v0 = vpop.f32.mrb[5].mxu0 }
 0x3a2   :  { %v553_v2 = vpop.f32.mrb[6].mxu0 }
 0x3a3   :  { %v1658_v4 = vadd.f32 %v551_v63, %v1569_v1  ;;  %v554_v5 = vadd.f32 %v553_v2, %v467_v61  ;;  %v1035_v6 = vpop.f32.mrb[7].mxu0 }
 0x3a5   :  { %v1661_v7 = vadd.f32 %v554_v5, %v1572_v3  ;;  %559 = vadd.xlane.f32.xlu0 %v1658_v4 }
 0x3a7   :  { %561 = vadd.xlane.f32.xlu1 %v1661_v7 }
 0x432   :  { %v560_v10 = vpop.xlane.xlu0 %559 }
 0x433   :  { %v564_v1 = vmul.f32 0.0078125, %v560_v10 }
 0x434   :  { %v562_v11 = vpop.xlane.xlu1 %561 }
 0x435   :  { %v566_v12 = vsub.f32 %v1658_v4, %v564_v1  ;;  %v565_v13 = vmul.f32 0.0078125, %v562_v11 }
 0x437   :  { %v567_v3 = vsub.f32 %v1661_v7, %v565_v13  ;;  %v568_v14 = vmul.f32 %v566_v12, %v566_v12 }
 0x439   :  { %570 = vadd.xlane.f32.xlu0 %v568_v14  ;;  %v569_v15 = vmul.f32 %v567_v3, %v567_v3 }
 0x43b   :  { %572 = vadd.xlane.f32.xlu1 %v569_v15 }
 0x4c6   :  { %v571_v23 = vpop.xlane.xlu0 %570 }
 0x4c7   :  { %v574_v24 = vmul.f32 0.0078125, %v571_v23 }
 0x4c8   :  { %v573_v25 = vpop.xlane.xlu1 %572 }
 0x4c9   :  { %v576_v26 = vadd.f32 1e-05, %v574_v24  ;;  %v575_v27 = vmul.f32 0.0078125, %v573_v25 }
 0x4cb   :  { %1139 = vrsqrt.f32 %v576_v26  ;;  %v577_v28 = vadd.f32 1e-05, %v575_v27 }
 0x4cd   :  { %1141 = vrsqrt.f32 %v577_v28 }
 0x4d5   :  { %v1140_v32 = vpop.eup %1139 }
 0x4d6   :  { %v580_v33 = vmul.f32 %v1140_v32, %v566_v12 }
 0x4d7   :  { %v1142_v34 = vpop.eup %1141 }
 0x4d8   :  { %v581_v35 = vmul.f32 %v1142_v34, %v567_v3  ;;  %v586_v36 = vmul.f32 %v585_v30, %v580_v33 }
 0x4da   :  { %v587_v38 = vmul.f32 %v585_v30, %v581_v35  ;;  %v592_v39 = vadd.f32 %v591_v37, %v586_v36 }
 0x4dc   :  { %v593_v40 = vadd.f32 %v591_v37, %v587_v38 }
 0x4de   :  { %v594_v41 = vpack.c.bf16 %v593_v40, %v592_v39 }
 0x4e0   :  { %1053 = vmatmul.mubr.bf16.vlgmr.msra.gmra.mrb[4].mxu1 %v594_v41 }
 0x5b3   :  { %v697_v57 = vpop.f32.mrb[4].mxu1 }
 0x5b4   :  { %v698_v58 = vadd.f32 %v697_v57, %v614_v56  ;;  %v1054_v59 = vpop.f32.mrb[5].mxu1 }
 0x5b5   :  { %v700_v60 = vpop.f32.mrb[6].mxu1 }
 0x5b6   :  { %v704_v61 = vmul.f32 %v698_v58, %v698_v58  ;;  %v701_v62 = vadd.f32 %v700_v60, %v614_v56  ;;  %v1055_v63 = vpop.f32.mrb[7].mxu1 }
 0x5b8   :  { %v706_v0 = vmul.f32 %v704_v61, %v698_v58  ;;  %v705_v2 = vmul.f32 %v701_v62, %v701_v62 }
 0x5ba   :  { %v708_v5 = vmul.f32 0.044715, %v706_v0  ;;  %v707_v6 = vmul.f32 %v705_v2, %v701_v62 }
 0x5bc   :  { %v710_v8 = vadd.f32 %v708_v5, %v698_v58  ;;  %v709_v9 = vmul.f32 0.044715, %v707_v6 }
 0x5be   :  { %v712_v22 = vmul.f32 0.7978846, %v710_v8  ;;  %v711_v10 = vadd.f32 %v709_v9, %v701_v62 }
 0x5c0   :  { %1143 = vtanh.f32 %v712_v22  ;;  %v713_v1 = vmul.f32 0.7978846, %v711_v10 }
 0x5c2   :  { %1145 = vtanh.f32 %v713_v1 }
 0x5ca   :  { %v1144_v11 = vpop.eup %1143 }
 0x5cb   :  { %v716_v50 = vadd.f32 1.0, %v1144_v11 }
 0x5cc   :  { %v1146_v12 = vpop.eup %1145 }
 0x5cd   :  { %v718_v13 = vmul.f32 0.5, %v716_v50  ;;  %v717_v3 = vadd.f32 1.0, %v1146_v12 }
 0x5cf   :  { %v719_v14 = vmul.f32 0.5, %v717_v3  ;;  %v720_v15 = vmul.f32 %v718_v13, %v698_v58 }
 0x5d1   :  { %v721_v16 = vmul.f32 %v719_v14, %v701_v62 }
 0x5d3   :  { %v722_v17 = vpack.c.bf16 %v721_v16, %v720_v15 }
 0x5d5   :  { %1073 = vmatmul.mubr.bf16.vlgmr.msra.gmra.mrb[8].mxu0 %v722_v17 }
 0x6a8   :  { %v825_v19 = vpop.f32.mrb[8].mxu0 }
 0x6a9   :  { %v826_v20 = vadd.f32 %v825_v19, %v742_v18  ;;  %v1074_v21 = vpop.f32.mrb[9].mxu0 }
 0x6aa   :  { %v828_v23 = vpop.f32.mrb[10].mxu0 }
 0x6ab   :  { %v829_v24 = vadd.f32 %v828_v23, %v742_v18  ;;  %v1075_v25 = vpop.f32.mrb[11].mxu0  ;;  %v832_v26 = vadd.f32 %v826_v20, %v1658_v4 }
 0x6ad   :  { %834 = vadd.xlane.f32.xlu0 %v832_v26  ;;  %v833_v27 = vadd.f32 %v829_v24, %v1661_v7  ;;  %v859_v7 = vrot.slane %v145_v55, %v201_v49 }
 0x6af   :  { %836 = vadd.xlane.f32.xlu1 %v833_v27 }
 0x73a   :  { %v835_v28 = vpop.xlane.xlu0 %834 }
 0x73b   :  { %v838_v29 = vmul.f32 0.0078125, %v835_v28 }
 0x73c   :  { %v837_v30 = vpop.xlane.xlu1 %836 }
 0x73d   :  { %v840_v31 = vsub.f32 %v832_v26, %v838_v29  ;;  %v839_v32 = vmul.f32 0.0078125, %v837_v30 }
 0x73f   :  { %v841_v33 = vsub.f32 %v833_v27, %v839_v32  ;;  %v842_v34 = vmul.f32 %v840_v31, %v840_v31 }
 0x741   :  { %844 = vadd.xlane.f32.xlu0 %v842_v34  ;;  %v843_v54 = vmul.f32 %v841_v33, %v841_v33 }
 0x743   :  { %846 = vadd.xlane.f32.xlu1 %v843_v54 }
 0x7ce   :  { %v845_v35 = vpop.xlane.xlu0 %844 }
 0x7cf   :  { %v848_v36 = vmul.f32 0.0078125, %v845_v35 }
 0x7d0   :  { %v847_v37 = vpop.xlane.xlu1 %846 }
 0x7d1   :  { %v850_v38 = vadd.f32 1e-05, %v848_v36  ;;  %v849_v39 = vmul.f32 0.0078125, %v847_v37 }
 0x7d3   :  { %1147 = vrsqrt.f32 %v850_v38  ;;  %v851_v4 = vadd.f32 1e-05, %v849_v39 }
 0x7d5   :  { %1149 = vrsqrt.f32 %v851_v4 }
 0x7dd   :  { %v1148_v40 = vpop.eup %1147 }
 0x7de   :  { %v854_v41 = vmul.f32 %v1148_v40, %v840_v31 }
 0x7df   :  { %v1150_v43 = vpop.eup %1149 }
 0x7e0   :  { %v855_v44 = vmul.f32 %v1150_v43, %v841_v33  ;;  %v860_v45 = vmul.f32 %v859_v7, %v854_v41 }
 0x7e2   :  { %v861_v51 = vmul.f32 %v859_v7, %v855_v44  ;;  %v866_v46 = vadd.f32 %v865_v42, %v860_v45 }
 0x7e4   :  { %v867_v47 = vadd.f32 %v865_v42, %v861_v51  ;;  %868 = vst [vmem:[#allocation16] sm:$0xff] %v866_v46 }
 0x7e6   :  { %869 = vst [vmem:[#allocation16 + $0x8] sm:$0xff] %v867_v47 }
 0x7e7   :  { %1338 = shalt.err (!%p1335_p12)
}
 0x7e8   :  { %s1339_s19 = scalar_lea.hbm %s1718_s8, 256 }
 0x7e9   :  { %p1340_p13 = scmp.ne.s32.totalorder %s1718_s8, %s1339_s19  ;;  %p1343_p0 = scmp.lt.u32.totalorder %s1339_s19, %s1718_s8 }
 0x7eb   :  { %p1345_p1 = pnand %p1343_p0, %p1340_p13 }
 0x7ed   :  { %1348 = shalt.err (!%p1345_p1)
}
 0x7ee   :  { %881 = dma.vmem_to_hbm [thread:$0]  %s876_s1, 256, %s1718_s8, [#allocation4], %s1363_s17, %s1363_s17, %s1364_s18  }
 0x7ef   :  { %1359 = dma.done.wait [#allocation4], 256  }
 0x7f0   :  { %1360 = vsyncadd [#allocation4], 4294967040 }
 0x7f1   :  { %885 = vsyncpa [#allocation3], 1 }
 0x7f2   :  { %886 = vsyncpa [#allocation6], 1 }
 0x7f3   :  { %887 = vsyncpa [#allocation9], 1 }
 0x7f4   :  { %888 = vsyncpa [#allocation12], 1 }
 0x7f5   :  { %889 = vsyncpa [#allocation15], 1 }
 0x7f6   :  { %890 = vsyncpa [#allocation4], 1 }

</bundles_post_ra>
